<compile_context>
chip_gen: v6e
topology: v6e:2x2x1
jax: 0.10.0
libtpu: 0.0.40
codegen_flags: <defaults>
</compile_context>

<pallas_src>
import jax
import jax.numpy as jnp
from jax import lax
from jax.experimental import pallas as pl
from jax.experimental.pallas import tpu as pltpu

EPS = 1e-5          # nn.InstanceNorm2d default
_MiB = 1024 * 1024


def _adain_kernel(x_ref, ss_ref, o_ref):
    # x_ref:  (R, HW)  tile of (n, c) instance rows, spatial on lanes
    # ss_ref: (R, 2)   f32, column 0 = (1 + gamma), column 1 = beta
    # o_ref:  (R, HW)
    inv_hw = 1.0 / x_ref.shape[1]
    xf = x_ref[...].astype(jnp.float32)

    # One-pass statistics with f32 accumulation.
    mean = jnp.sum(xf, axis=1, keepdims=True) * inv_hw              # (R, 1)
    mean_sq = jnp.sum(xf * xf, axis=1, keepdims=True) * inv_hw      # (R, 1)
    var = jnp.maximum(mean_sq - mean * mean, 0.0)                   # biased, clamped
    inv_std = lax.rsqrt(var + EPS)                                  # EUP

    scale = ss_ref[:, 0:1]                                          # (R, 1) = 1+gamma
    shift = ss_ref[:, 1:2]                                          # (R, 1) = beta

    # Fold (x - mean)*inv_std*(1+gamma) + beta into one FMA: x*a + b.
    a = scale * inv_std
    b = shift - mean * a
    o_ref[...] = (xf * a + b).astype(o_ref.dtype)


def _vmem_capacity_bytes():
    try:
        return int(pltpu.get_tpu_info().vmem_capacity_bytes)
    except Exception:
        return 64 * _MiB  # conservative (v7x per-core VMEM)


def _pick_row_tile(rows, hw, itemsize, vmem_cap):
    """Choose (row_tile, grid_steps, vmem_limit_bytes).

    Prefers a divisor of `rows` (no ragged block, no padding), dtype-native
    sublane granularity, blocks large enough to amortize per-step overhead,
    and >= 2 grid steps for v7x dual-TensorCore sharding when possible.
    """
    granule = max(8, 32 // itemsize)            # 8 f32 / 16 bf16 / 32 int8
    row_bytes = hw * itemsize
    # VMEM per byte of x block: 2 input bufs + 2 output bufs + 1 f32 temp.
    factor = 4 + max(1, 4 // itemsize)
    # Generation-aware pipeline budget (~62% of VMEM, capped).
    pipeline_budget = min(int(vmem_cap * 0.625), 64 * _MiB)
    max_block_bytes = pipeline_budget // factor
    max_rows_fit = max(1, max_block_bytes // row_bytes)

    if rows <= granule:
        row_tile = rows                         # block dim == full array dim
    else:
        # Want several grid steps (dual-TC on v7x, pipelining) but keep blocks
        # >= ~2 MiB so the ~0.35us/step overhead stays amortized.
        desired_steps = 8
        while desired_steps > 2 and (rows // desired_steps) * row_bytes < 2 * _MiB:
            desired_steps //= 2
        cap_steps = max(granule, ((rows // desired_steps) // granule) * granule)
        limit = max(granule, min((max_rows_fit // granule) * granule, cap_steps))
        # Prefer a divisor of rows that is a granule multiple (no ragged block).
        row_tile = 0
        for d in range(limit, granule - 1, -granule):
            if rows % d == 0:
                row_tile = d
                break
        if row_tile == 0:
            row_tile = limit                    # ragged last block; writes masked

    grid_steps = pl.cdiv(rows, row_tile)

    # TODO(synk): for very large H*W (one granule of rows already exceeds the
    # VMEM budget) a second grid axis over HW with scratch-accumulated
    # sum/sumsq and a finalize pass would be needed; not implemented here.
    block_bytes = row_tile * row_bytes
    needed = factor * block_bytes + 2 * _MiB    # slack for ss bufs + misc
    vmem_limit = min(vmem_cap, max(needed, 32 * _MiB))
    return row_tile, int(grid_steps), int(vmem_limit)


@jax.jit
def adain_pallas(x_nchw, s, w, b):
    """x_nchw: (N, C, H, W); s: (N, S); w: (S, 2C) = fc.weight.T; b: (2C,)."""
    N, C, H, W = x_nchw.shape
    HW = H * W
    rows = N * C

    # --- style fc once, in XLA (single (N,S)x(S,2C) matmul) ---
    h = (s.astype(jnp.float32) @ w.astype(jnp.float32)
         + b.astype(jnp.float32))                          # (N, 2C)
    gamma = h[:, :C]
    beta = h[:, C:]
    # Pack per-row (1+gamma, beta) into one (rows, 2) f32 array -> single DMA.
    ss = jnp.stack([1.0 + gamma, beta], axis=-1).reshape(rows, 2)

    # --- free (no-transpose, no-pad) view: rows = (n, c), lanes = spatial ---
    x2d = x_nchw.reshape(rows, HW)

    itemsize = jnp.dtype(x_nchw.dtype).itemsize
    row_tile, grid_steps, vmem_limit = _pick_row_tile(
        rows, HW, itemsize, _vmem_capacity_bytes())

    out2d = pl.pallas_call(
        _adain_kernel,
        out_shape=jax.ShapeDtypeStruct((rows, HW), x_nchw.dtype),
        grid_spec=pltpu.PrefetchScalarGridSpec(
            num_scalar_prefetch=0,
            grid=(grid_steps,),
            in_specs=[
                pl.BlockSpec((row_tile, HW), lambda i: (i, 0)),   # x rows
                pl.BlockSpec((row_tile, 2), lambda i: (i, 0)),    # (1+gamma, beta)
            ],
            out_specs=pl.BlockSpec((row_tile, HW), lambda i: (i, 0)),
        ),
        compiler_params=pltpu.CompilerParams(
            dimension_semantics=("parallel",),
            vmem_limit_bytes=vmem_limit,
        ),
    )(x2d, ss)

    return out2d.reshape(N, C, H, W)


def adain_reference(x_nchw, s, w, b):
    """Pure-JAX reference matching the PyTorch module semantics."""
    h = s @ w + b                                # (N, 2C)
    C = x_nchw.shape[1]
    gamma = h[:, :C][:, :, None, None]
    beta = h[:, C:][:, :, None, None]
    mean = x_nchw.mean(axis=(2, 3), keepdims=True)
    var = ((x_nchw - mean) ** 2).mean(axis=(2, 3), keepdims=True)
    x_norm = (x_nchw - mean) / jnp.sqrt(var + EPS)
    return (1.0 + gamma) * x_norm + beta


if __name__ == "__main__":
    # Small shapes consistent with the module's forward.
    N, C, H, W = 2, 4, 16, 16
    STYLE_DIM = 32

    key = jax.random.PRNGKey(0)
    kx, ks, kw, kb = jax.random.split(key, 4)

    x = jax.random.normal(kx, (N, C, H, W), dtype=jnp.float32)
    s = jax.random.normal(ks, (N, STYLE_DIM), dtype=jnp.float32)

    # fc params of Linear(style_dim, 2*C); stored as (in, out) = W.T.
    bound = 1.0 / (STYLE_DIM ** 0.5)
    w = jax.random.uniform(kw, (STYLE_DIM, 2 * C), jnp.float32, -bound, bound)
    b = jax.random.uniform(kb, (2 * C,), jnp.float32, -bound, bound)

    out = adain_pallas(x, s, w, b)
    out = jax.block_until_ready(out)

    ref = adain_reference(x, s, w, b)
    assert out.shape == (N, C, H, W), out.shape
    assert jnp.allclose(out, ref, atol=1e-4, rtol=1e-4), (
        float(jnp.max(jnp.abs(out - ref))))

    print("KERNEL_OK")
</pallas_src>

<mosaic_0001>
module attributes {stable_mosaic.version = 11 : i64} {
  func.func @_adain_kernel(%arg0: i32, %arg1: memref<8x256xf32, #tpu.memory_space<vmem>>, %arg2: memref<8x2xf32, #tpu.memory_space<vmem>>, %arg3: memref<8x256xf32, #tpu.memory_space<vmem>>) attributes {dimension_semantics = [#tpu.dimension_semantics<parallel>], iteration_bounds = array<i64: 1>, scalar_prefetch = 0 : i64, scratch_operands = 0 : i64, tpu.core_type = #tpu.core_type<tc>, window_params = [{transform_indices = @transform_0, window_bounds = array<i64: 8, 256>}, {transform_indices = @transform_1, window_bounds = array<i64: 8, 2>}, {transform_indices = @transform_2, window_bounds = array<i64: 8, 256>}]} {
    %c0 = arith.constant 0 : index
    %c0_0 = arith.constant 0 : index
    %0 = vector.load %arg1[%c0, %c0_0] : memref<8x256xf32, #tpu.memory_space<vmem>>, vector<8x256xf32>
    %cst = arith.constant dense<0.000000e+00> : vector<8xf32>
    %1 = vector.multi_reduction <add>, %0, %cst [1] : vector<8x256xf32> to vector<8xf32>
    %2 = vector.shape_cast %1 : vector<8xf32> to vector<8x1xf32>
    %cst_1 = arith.constant 3.906250e-03 : f32
    %3 = vector.broadcast %cst_1 : f32 to vector<8x1xf32>
    %4 = arith.mulf %2, %3 : vector<8x1xf32>
    %5 = arith.mulf %0, %0 : vector<8x256xf32>
    %cst_2 = arith.constant dense<0.000000e+00> : vector<8xf32>
    %6 = vector.multi_reduction <add>, %5, %cst_2 [1] : vector<8x256xf32> to vector<8xf32>
    %7 = vector.shape_cast %6 : vector<8xf32> to vector<8x1xf32>
    %cst_3 = arith.constant 3.906250e-03 : f32
    %8 = vector.broadcast %cst_3 : f32 to vector<8x1xf32>
    %9 = arith.mulf %7, %8 : vector<8x1xf32>
    %10 = arith.mulf %4, %4 : vector<8x1xf32>
    %11 = arith.subf %9, %10 : vector<8x1xf32>
    %cst_4 = arith.constant 0.000000e+00 : f32
    %12 = vector.broadcast %cst_4 : f32 to vector<8x1xf32>
    %13 = arith.maximumf %11, %12 : vector<8x1xf32>
    %cst_5 = arith.constant 9.99999974E-6 : f32
    %14 = vector.broadcast %cst_5 : f32 to vector<8x1xf32>
    %15 = arith.addf %13, %14 : vector<8x1xf32>
    %16 = math.rsqrt %15 : vector<8x1xf32>
    %c0_6 = arith.constant 0 : index
    %c0_7 = arith.constant 0 : index
    %17 = vector.load %arg2[%c0_6, %c0_7] : memref<8x2xf32, #tpu.memory_space<vmem>>, vector<8x1xf32>
    %c0_8 = arith.constant 0 : index
    %c1 = arith.constant 1 : index
    %18 = vector.load %arg2[%c0_8, %c1] : memref<8x2xf32, #tpu.memory_space<vmem>>, vector<8x1xf32>
    %19 = arith.mulf %17, %16 : vector<8x1xf32>
    %20 = arith.mulf %4, %19 : vector<8x1xf32>
    %21 = arith.subf %18, %20 : vector<8x1xf32>
    %22 = vector.broadcast %19 : vector<8x1xf32> to vector<8x256xf32>
    %23 = arith.mulf %0, %22 : vector<8x256xf32>
    %24 = vector.broadcast %21 : vector<8x1xf32> to vector<8x256xf32>
    %25 = arith.addf %23, %24 : vector<8x256xf32>
    %c0_9 = arith.constant 0 : index
    %c0_10 = arith.constant 0 : index
    %26 = vector.load %arg3[%c0_9, %c0_10] : memref<8x256xf32, #tpu.memory_space<vmem>>, vector<8x256xf32>
    tpu.vector_store %arg3[%c0_9, %c0_10], %25 {strides = array<i32>} : memref<8x256xf32, #tpu.memory_space<vmem>>, vector<8x256xf32>,
    return
  }
  func.func @transform_0(%arg0: i32) -> (i32, i32) {
    %c0_i32 = arith.constant 0 : i32
    %c0_i32_0 = arith.constant 0 : i32
    return %arg0, %c0_i32 : i32, i32
  }
  func.func @transform_1(%arg0: i32) -> (i32, i32) {
    %c0_i32 = arith.constant 0 : i32
    %c0_i32_0 = arith.constant 0 : i32
    return %arg0, %c0_i32 : i32, i32
  }
  func.func @transform_2(%arg0: i32) -> (i32, i32) {
    %c0_i32 = arith.constant 0 : i32
    %c0_i32_0 = arith.constant 0 : i32
    return %arg0, %c0_i32 : i32, i32
  }
}

</mosaic_0001>

<bundles_post_ra>
// kernel: adain_pallas.1
= control target key start
LH: loop header
LB: loop body
LE: loop exit
PB: predicated region body
PF: predicated region fallthrough
CT: control target
= control target key end

     0   :  { %v63_v6 = vmov 0   ;;  %v64_v15 = vmov 1   ;;  %s65_s14 = smov 1   ;;  %s96_s0 = inlined_call_operand.vmem [shape: f32[8,256], index: 0, kind: input, shape index: {}]   ;;  %s97_s1 = inlined_call_operand.vmem [shape: f32[8,2], index: 1, kind: input, shape index: {}]   ;;  %s98_s2 = inlined_call_operand.vmem [shape: f32[8,256], index: 2, kind: output, shape index: {}]  }
   0x1   :  { %v11_v0 = vld [vmem:[%s96_s0] sm:$0xff]  ;;  %v12_v1 = vld [vmem:[%s96_s0 + $0x8] sm:$0xff]  ;;  %59 = vset.pattern.permute.xlu1 %v63_v6  ;;  %60 = vset.pattern.permute.xlu0 %v64_v15 }
   0x2   :  { %v13_v2 = vadd.f32 %v12_v1, %v11_v0  ;;  %v17_v3 = vmul.f32 %v11_v0, %v11_v0  ;;  %v18_v4 = vmul.f32 %v12_v1, %v12_v1  ;;  %v28_v16 = vld [vmem:[%s97_s1] sm:$0xff] }
   0x4   :  { %14 = vadd.xlane.f32.xlu0 %v13_v2  ;;  %v19_v5 = vadd.f32 %v18_v4, %v17_v3 }
   0x8   :  { %20 = vadd.xlane.f32.xlu0 %v19_v5 }
  0x8d   :  { %v15_v7 = vpop.xlane.xlu0 %14 }
  0x8e   :  { %v16_v8 = vmul.f32 0.00390625, %v15_v7 }
  0x90   :  { %v23_v10 = vmul.f32 %v16_v8, %v16_v8 }
  0x91   :  { %v21_v9 = vpop.xlane.xlu0 %20 }
  0x92   :  { %v22_v11 = vmul.f32 0.00390625, %v21_v9 }
  0x94   :  { %v24_v12 = vsub.f32 %v22_v11, %v23_v10 }
  0x96   :  { %v25_v13 = vmax.f32 %v24_v12, 0.0 }
  0x98   :  { %v26_v14 = vadd.f32 1e-05, %v25_v13 }
  0x9a   :  { %61 = vrsqrt.f32 %v26_v14 }
  0xa7   :  { %v62_v17 = vpop.eup %61 }
  0xa8   :  { %v29_v18 = vmul.f32 %v62_v17, %v28_v16 }
  0xaa   :  { %v30_v19 = vmul.f32 %v29_v18, %v16_v8 }
  0xac   :  { %32 = vrot.lane.b32.xlu1 %v30_v19, %s65_s14 }
  0xb0   :  { %38 = vperm.xlu1 %59, %v29_v18  }
 0x11e   :  { %v33_v20 = vpop.permute.xlu1 %32 }
 0x11f   :  { %v35_v21 = vsub.f32 %v28_v16, %v33_v20 }
 0x121   :  { %45 = vperm.xlu0 %60, %v35_v21  }
 0x12b   :  { %v39_v22 = vpop.permute.xlu1 %38 }
 0x12c   :  { %v41_v23 = vmul.f32 %v39_v22, %v11_v0  ;;  %v42_v24 = vmul.f32 %v39_v22, %v12_v1 }
 0x19c   :  { %v46_v25 = vpop.permute.xlu0 %45 }
 0x19d   :  { %v48_v26 = vadd.f32 %v46_v25, %v41_v23  ;;  %v49_v27 = vadd.f32 %v46_v25, %v42_v24 }
 0x19f   :  { %50 = vst [vmem:[%s98_s2] sm:$0xff] %v48_v26  ;;  %51 = vst [vmem:[%s98_s2 + $0x8] sm:$0xff] %v49_v27 }

</bundles_post_ra>
